<compile_context>
chip_gen: v7x
topology: tpu7x:2x2x1
jax: 0.10.0
libtpu: 0.0.40
codegen_flags: <defaults>
</compile_context>

<pallas_src>
import functools
import math

import jax
import jax.numpy as jnp
from jax.experimental import pallas as pl
from jax.experimental.pallas import tpu as pltpu

_LANE = 128


def _round_up(x, m):
    return (x + m - 1) // m * m


def _vmem_capacity_bytes():
    """Physical VMEM of the attached TPU; conservative 64 MiB if unknown."""
    try:
        info = pltpu.get_tpu_info()
        cap = getattr(info, "vmem_capacity_bytes", None)
        if cap:
            return int(cap)
    except Exception:
        pass
    return 64 << 20  # v7x per-core physical VMEM (smallest current part)


# ----------------------------------------------------------------------------
# Fused path: all layers in one pallas_call, weights resident in VMEM.
# ----------------------------------------------------------------------------
def _fused_mlp_kernel(*refs, num_layers):
    """refs = (x_ref, w0, b0, ..., w_{L-1}, b_{L-1}, o_ref).

    x_ref: (TM, K0)  w_i: (K_i, N_i) [compute dtype]  b_i: (1, N_i) [f32]
    o_ref: (TM, N_last).  Computes Linear -> ReLU -> ... -> Linear.
    """
    x_ref = refs[0]
    o_ref = refs[-1]
    h = x_ref[...]
    for i in range(num_layers):
        w_ref = refs[1 + 2 * i]
        b_ref = refs[2 + 2 * i]
        # bf16 (or compute dtype) MXU matmul with f32 accumulation.
        y = jnp.dot(h.astype(w_ref.dtype), w_ref[...],
                    preferred_element_type=jnp.float32)
        y = y + b_ref[...].astype(jnp.float32)
        if i < num_layers - 1:
            y = jnp.maximum(y, 0.0)
        h = y
    o_ref[...] = h.astype(o_ref.dtype)


def _fused_mlp_pallas(x2d, weights, biases2d, *, tm, out_dtype,
                      vmem_limit_bytes, single_buffer_weights):
    num_layers = len(weights)
    m, k0 = x2d.shape
    n_last = weights[-1].shape[1]
    grid = (pl.cdiv(m, tm),)

    const_kwargs = {}
    if single_buffer_weights:
        # Constant index_map -> no need for double-buffering these operands.
        const_kwargs = dict(pipeline_mode=pl.Buffered(1))

    in_specs = [pl.BlockSpec((tm, k0), lambda i: (i, 0))]
    args = [x2d]
    for w, b2 in zip(weights, biases2d):
        kin, nout = w.shape
        in_specs.append(pl.BlockSpec((kin, nout), lambda i: (0, 0),
                                     **const_kwargs))
        in_specs.append(pl.BlockSpec((1, nout), lambda i: (0, 0),
                                     **const_kwargs))
        args.append(w)
        args.append(b2)

    out_specs = pl.BlockSpec((tm, n_last), lambda i: (i, 0))
    kernel = functools.partial(_fused_mlp_kernel, num_layers=num_layers)

    return pl.pallas_call(
        kernel,
        out_shape=jax.ShapeDtypeStruct((m, n_last), out_dtype),
        grid_spec=pl.GridSpec(grid=grid, in_specs=in_specs,
                              out_specs=out_specs),
        compiler_params=pltpu.CompilerParams(
            dimension_semantics=("parallel",),
            vmem_limit_bytes=int(vmem_limit_bytes),
        ),
    )(*args)


# ----------------------------------------------------------------------------
# Fallback path: one pallas_call per layer, tiled over (M, N).  Used only when
# the resident-weight fused design cannot fit the VMEM budget.
# ----------------------------------------------------------------------------
def _linear_kernel(x_ref, w_ref, b_ref, o_ref, *, apply_relu):
    y = jnp.dot(x_ref[...].astype(w_ref.dtype), w_ref[...],
                preferred_element_type=jnp.float32)
    y = y + b_ref[...].astype(jnp.float32)
    if apply_relu:
        y = jnp.maximum(y, 0.0)
    o_ref[...] = y.astype(o_ref.dtype)


def _linear_pallas(x2d, w, b2, *, apply_relu, tm, tn, out_dtype,
                   vmem_limit_bytes):
    m, k = x2d.shape
    _, n = w.shape
    grid = (pl.cdiv(m, tm), pl.cdiv(n, tn))
    kernel = functools.partial(_linear_kernel, apply_relu=apply_relu)
    return pl.pallas_call(
        kernel,
        out_shape=jax.ShapeDtypeStruct((m, n), out_dtype),
        grid_spec=pl.GridSpec(
            grid=grid,
            in_specs=[
                pl.BlockSpec((tm, k), lambda i, j: (i, 0)),
                pl.BlockSpec((k, tn), lambda i, j: (0, j)),
                pl.BlockSpec((1, tn), lambda i, j: (0, j)),
            ],
            out_specs=pl.BlockSpec((tm, tn), lambda i, j: (i, j)),
        ),
        compiler_params=pltpu.CompilerParams(
            dimension_semantics=("parallel", "parallel"),
            vmem_limit_bytes=int(vmem_limit_bytes),
        ),
    )(x2d, w, b2)


# ----------------------------------------------------------------------------
# Module wrapper
# ----------------------------------------------------------------------------
class MLPPallas:
    """Mirrors the PyTorch MLP: Linear layers with ReLU on all but the last."""

    def __init__(self, input_dim, hidden_dim, output_dim, num_layers, key,
                 compute_dtype=jnp.bfloat16, vmem_budget_override_bytes=None):
        self.num_layers = num_layers
        self.input_dim = input_dim
        self.output_dim = output_dim
        self.compute_dtype = jnp.dtype(compute_dtype)

        h = [hidden_dim] * (num_layers - 1)
        in_dims = [input_dim] + h
        out_dims = h + [output_dim]
        self._max_dim = max(in_dims + out_dims)

        # f32 master parameters (also used by the reference).
        self.weights = []
        self.biases = []
        for n_in, n_out in zip(in_dims, out_dims):
            key, wk, bk = jax.random.split(key, 3)
            bound = 1.0 / (n_in ** 0.5)  # nn.Linear default init bounds
            w = jax.random.uniform(wk, (n_in, n_out), jnp.float32, -bound, bound)
            b = jax.random.uniform(bk, (n_out,), jnp.float32, -bound, bound)
            self.weights.append(w)
            self.biases.append(b)

        # Kernel-side parameters: weights in compute dtype (bf16 by default),
        # biases kept f32 as (1, N) rows.  Converted once at init.
        self._weights_c = [w.astype(self.compute_dtype) for w in self.weights]
        self._biases2d = [b.reshape(1, -1) for b in self.biases]
        self._param_bytes = (
            sum(int(w.size) * w.dtype.itemsize for w in self._weights_c)
            + sum(int(b.size) * b.dtype.itemsize for b in self._biases2d))

        # bf16 packs 16 rows per (16,128) sublane tile.
        self._row_align = max(8, 32 // self.compute_dtype.itemsize)

        # Generation-aware VMEM budgeting.
        self._vmem_cap = _vmem_capacity_bytes()
        if vmem_budget_override_bytes is not None:
            self._budget_bytes = int(vmem_budget_override_bytes)
        else:
            self._budget_bytes = int(0.6 * self._vmem_cap)

    # ----- VMEM accounting --------------------------------------------------
    def _fused_need_bytes(self, tm):
        # Weights/biases counted 2x even though we request single-buffering
        # (covers the case where pipeline_mode is not honored).
        pbytes = 2 * self._param_bytes
        io = 2 * tm * (self.input_dim * 4 + self.output_dim * 4)  # dbl-buffered x/out
        inter = 3 * tm * self._max_dim * 4                        # live f32 + bf16 cast
        return pbytes + io + inter

    def _vmem_limit(self, need):
        cap = self._vmem_cap
        limit = min(max(int(need * 1.5), 32 << 20), int(0.85 * cap))
        return max(limit, min(int(need) + (4 << 20), cap))

    def _pick_tm(self, m):
        row = self._row_align
        m_al = _round_up(max(m, 1), row)
        # Target >=4 grid blocks (megacore + pipelining) but keep >=128 rows
        # when M affords it; cap at 512.
        tm = _round_up(pl.cdiv(m_al, 4), row)
        tm = max(min(tm, 512), min(128, m_al))
        tm = min(tm, m_al)
        while tm > row and self._fused_need_bytes(tm) > self._budget_bytes:
            tm = _round_up(max(row, tm // 2), row)
        return tm

    def _pick_layer_tiles(self, m, k, n, x_itemsize, o_itemsize):
        row = self._row_align
        m_al = _round_up(max(m, 1), row)
        tm = min(256, m_al)
        tn = min(512, n) if n % _LANE == 0 else n
        w_it = self.compute_dtype.itemsize

        def need(tm_, tn_):
            return (2 * tm_ * k * x_itemsize + 2 * k * tn_ * w_it
                    + 2 * tn_ * 4 + 2 * tm_ * tn_ * o_itemsize
                    + tm_ * tn_ * 4)

        while need(tm, tn) > self._budget_bytes and n % _LANE == 0 and tn > _LANE:
            tn = max(_LANE, tn // 2)
        while need(tm, tn) > self._budget_bytes and tm > row:
            tm = _round_up(max(row, tm // 2), row)
        return tm, tn, need(tm, tn)

    # ----- forward ------------------------------------------------------------
    def _layerwise_forward(self, x2d, out_dtype):
        h = x2d
        for i, (w, b2) in enumerate(zip(self._weights_c, self._biases2d)):
            k, n = w.shape
            is_last = i == self.num_layers - 1
            layer_dtype = out_dtype if is_last else self.compute_dtype
            tm, tn, need = self._pick_layer_tiles(
                h.shape[0], k, n, h.dtype.itemsize,
                jnp.dtype(layer_dtype).itemsize)
            h = _linear_pallas(h, w, b2, apply_relu=not is_last, tm=tm, tn=tn,
                               out_dtype=layer_dtype,
                               vmem_limit_bytes=self._vmem_limit(need))
        return h

    def __call__(self, x):
        orig_shape = x.shape
        m = math.prod(orig_shape[:-1]) if len(orig_shape) > 1 else 1
        x2d = x.reshape(m, orig_shape[-1])

        if self._fused_need_bytes(self._row_align) <= self._budget_bytes:
            tm = self._pick_tm(m)
            limit = self._vmem_limit(self._fused_need_bytes(tm))
            try:
                out2d = _fused_mlp_pallas(
                    x2d, self._weights_c, self._biases2d, tm=tm,
                    out_dtype=x.dtype, vmem_limit_bytes=limit,
                    single_buffer_weights=True)
            except Exception:
                # pipeline_mode/Buffered not supported by this jax build:
                # rebuild with default (double-buffered) weight specs.
                out2d = _fused_mlp_pallas(
                    x2d, self._weights_c, self._biases2d, tm=tm,
                    out_dtype=x.dtype, vmem_limit_bytes=limit,
                    single_buffer_weights=False)
        else:
            # Resident weights would overflow VMEM: per-layer (M, N)-tiled path.
            out2d = self._layerwise_forward(x2d, x.dtype)

        return out2d.reshape(*orig_shape[:-1], self.output_dim)


def _reference_mlp(x, weights, biases, num_layers, compute_dtype):
    """Pure-JAX reference mirroring the kernel numerics (bf16 dot, f32 accum)."""
    orig_shape = x.shape
    h = x.reshape(-1, orig_shape[-1])
    for i, (w, b) in enumerate(zip(weights, biases)):
        h = jnp.dot(h.astype(compute_dtype), w.astype(compute_dtype),
                    preferred_element_type=jnp.float32) + b
        if i < num_layers - 1:
            h = jnp.maximum(h, 0.0)
    return h.astype(x.dtype).reshape(*orig_shape[:-1], h.shape[-1])


if __name__ == "__main__":
    key = jax.random.PRNGKey(0)
    kx, kp1, kp2 = jax.random.split(key, 3)

    # Small shapes consistent with the MLP forward (applied to last dim):
    # x: (num_queries, batch, input_dim)
    num_queries, batch = 8, 2
    input_dim, hidden_dim, output_dim, num_layers = 32, 64, 16, 3

    x = jax.random.normal(kx, (num_queries, batch, input_dim), jnp.float32)

    # Fused path (single pallas_call, VMEM-resident bf16 weights).
    mlp = MLPPallas(input_dim, hidden_dim, output_dim, num_layers, kp1)
    out = jax.block_until_ready(mlp(x))
    ref = _reference_mlp(x, mlp.weights, mlp.biases, num_layers,
                         mlp.compute_dtype)
    assert out.shape == (num_queries, batch, output_dim), out.shape
    assert out.dtype == x.dtype, out.dtype
    assert jnp.allclose(out, ref, atol=5e-3, rtol=5e-3), "fused mismatch"

    # Layer-wise fallback path, forced via a tiny VMEM working budget.
    mlp_fb = MLPPallas(input_dim, hidden_dim, output_dim, num_layers, kp2,
                       vmem_budget_override_bytes=16 << 10)
    out_fb = jax.block_until_ready(mlp_fb(x))
    ref_fb = _reference_mlp(x, mlp_fb.weights, mlp_fb.biases, num_layers,
                            mlp_fb.compute_dtype)
    assert out_fb.shape == (num_queries, batch, output_dim), out_fb.shape
    assert jnp.allclose(out_fb, ref_fb, atol=5e-3, rtol=5e-3), "fallback mismatch"

    print("KERNEL_OK")
</pallas_src>

<mosaic_0001>
module attributes {stable_mosaic.version = 11 : i64} {
  func.func @_fused_mlp_kernel(%arg0: i32, %arg1: memref<16x32xf32, #tpu.memory_space<vmem>>, %arg2: memref<32x64xbf16, #tpu.memory_space<vmem>>, %arg3: memref<1x64xf32, #tpu.memory_space<vmem>>, %arg4: memref<64x64xbf16, #tpu.memory_space<vmem>>, %arg5: memref<1x64xf32, #tpu.memory_space<vmem>>, %arg6: memref<64x16xbf16, #tpu.memory_space<vmem>>, %arg7: memref<1x16xf32, #tpu.memory_space<vmem>>, %arg8: memref<16x16xf32, #tpu.memory_space<vmem>>) attributes {dimension_semantics = [#tpu.dimension_semantics<parallel>], iteration_bounds = array<i64: 1>, scalar_prefetch = 0 : i64, scratch_operands = 0 : i64, tpu.core_type = #tpu.core_type<tc>, window_params = [{transform_indices = @transform_0, window_bounds = array<i64: 16, 32>}, {pipeline_mode = #tpu.pipeline_mode<synchronous>, transform_indices = @transform_1, window_bounds = array<i64: 32, 64>}, {pipeline_mode = #tpu.pipeline_mode<synchronous>, transform_indices = @transform_2, window_bounds = array<i64: 1, 64>}, {pipeline_mode = #tpu.pipeline_mode<synchronous>, transform_indices = @transform_3, window_bounds = array<i64: 64, 64>}, {pipeline_mode = #tpu.pipeline_mode<synchronous>, transform_indices = @transform_4, window_bounds = array<i64: 1, 64>}, {pipeline_mode = #tpu.pipeline_mode<synchronous>, transform_indices = @transform_5, window_bounds = array<i64: 64, 16>}, {pipeline_mode = #tpu.pipeline_mode<synchronous>, transform_indices = @transform_6, window_bounds = array<i64: 1, 16>}, {transform_indices = @transform_7, window_bounds = array<i64: 16, 16>}]} {
    %c0 = arith.constant 0 : index
    %c0_0 = arith.constant 0 : index
    %0 = vector.load %arg1[%c0, %c0_0] : memref<16x32xf32, #tpu.memory_space<vmem>>, vector<16x32xf32>
    %1 = arith.truncf %0 : vector<16x32xf32> to vector<16x32xbf16>
    %c0_1 = arith.constant 0 : index
    %c0_2 = arith.constant 0 : index
    %2 = vector.load %arg2[%c0_1, %c0_2] : memref<32x64xbf16, #tpu.memory_space<vmem>>, vector<32x64xbf16>
    %cst = arith.constant dense<0.000000e+00> : vector<16x64xf32>
    %3 = tpu.matmul %1, %2, %cst {dimension_numbers = #tpu.dot_dimension_numbers<[1], [0], [0], [1], [0, 0, 1, 1], [], []>} : vector<16x32xbf16>, vector<32x64xbf16>, vector<16x64xf32> -> vector<16x64xf32>
    %c0_3 = arith.constant 0 : index
    %c0_4 = arith.constant 0 : index
    %4 = vector.load %arg3[%c0_3, %c0_4] : memref<1x64xf32, #tpu.memory_space<vmem>>, vector<1x64xf32>
    %5 = vector.broadcast %4 : vector<1x64xf32> to vector<16x64xf32>
    %6 = arith.addf %3, %5 : vector<16x64xf32>
    %cst_5 = arith.constant 0.000000e+00 : f32
    %7 = vector.broadcast %cst_5 : f32 to vector<16x64xf32>
    %8 = arith.maximumf %6, %7 : vector<16x64xf32>
    %9 = arith.truncf %8 : vector<16x64xf32> to vector<16x64xbf16>
    %c0_6 = arith.constant 0 : index
    %c0_7 = arith.constant 0 : index
    %10 = vector.load %arg4[%c0_6, %c0_7] : memref<64x64xbf16, #tpu.memory_space<vmem>>, vector<64x64xbf16>
    %cst_8 = arith.constant dense<0.000000e+00> : vector<16x64xf32>
    %11 = tpu.matmul %9, %10, %cst_8 {dimension_numbers = #tpu.dot_dimension_numbers<[1], [0], [0], [1], [0, 0, 1, 1], [], []>} : vector<16x64xbf16>, vector<64x64xbf16>, vector<16x64xf32> -> vector<16x64xf32>
    %c0_9 = arith.constant 0 : index
    %c0_10 = arith.constant 0 : index
    %12 = vector.load %arg5[%c0_9, %c0_10] : memref<1x64xf32, #tpu.memory_space<vmem>>, vector<1x64xf32>
    %13 = vector.broadcast %12 : vector<1x64xf32> to vector<16x64xf32>
    %14 = arith.addf %11, %13 : vector<16x64xf32>
    %cst_11 = arith.constant 0.000000e+00 : f32
    %15 = vector.broadcast %cst_11 : f32 to vector<16x64xf32>
    %16 = arith.maximumf %14, %15 : vector<16x64xf32>
    %17 = arith.truncf %16 : vector<16x64xf32> to vector<16x64xbf16>
    %c0_12 = arith.constant 0 : index
    %c0_13 = arith.constant 0 : index
    %18 = vector.load %arg6[%c0_12, %c0_13] : memref<64x16xbf16, #tpu.memory_space<vmem>>, vector<64x16xbf16>
    %cst_14 = arith.constant dense<0.000000e+00> : vector<16x16xf32>
    %19 = tpu.matmul %17, %18, %cst_14 {dimension_numbers = #tpu.dot_dimension_numbers<[1], [0], [0], [1], [0, 0, 1, 1], [], []>} : vector<16x64xbf16>, vector<64x16xbf16>, vector<16x16xf32> -> vector<16x16xf32>
    %c0_15 = arith.constant 0 : index
    %c0_16 = arith.constant 0 : index
    %20 = vector.load %arg7[%c0_15, %c0_16] : memref<1x16xf32, #tpu.memory_space<vmem>>, vector<1x16xf32>
    %21 = vector.broadcast %20 : vector<1x16xf32> to vector<16x16xf32>
    %22 = arith.addf %19, %21 : vector<16x16xf32>
    %c0_17 = arith.constant 0 : index
    %c0_18 = arith.constant 0 : index
    %23 = vector.load %arg8[%c0_17, %c0_18] : memref<16x16xf32, #tpu.memory_space<vmem>>, vector<16x16xf32>
    tpu.vector_store %arg8[%c0_17, %c0_18], %22 {strides = array<i32>} : memref<16x16xf32, #tpu.memory_space<vmem>>, vector<16x16xf32>,
    return
  }
  func.func @transform_0(%arg0: i32) -> (i32, i32) {
    %c0_i32 = arith.constant 0 : i32
    %c0_i32_0 = arith.constant 0 : i32
    return %arg0, %c0_i32 : i32, i32
  }
  func.func @transform_1(%arg0: i32) -> (i32, i32) {
    %c0_i32 = arith.constant 0 : i32
    %c0_i32_0 = arith.constant 0 : i32
    %c0_i32_1 = arith.constant 0 : i32
    return %c0_i32, %c0_i32_0 : i32, i32
  }
  func.func @transform_2(%arg0: i32) -> (i32, i32) {
    %c0_i32 = arith.constant 0 : i32
    %c0_i32_0 = arith.constant 0 : i32
    %c0_i32_1 = arith.constant 0 : i32
    return %c0_i32, %c0_i32_0 : i32, i32
  }
  func.func @transform_3(%arg0: i32) -> (i32, i32) {
    %c0_i32 = arith.constant 0 : i32
    %c0_i32_0 = arith.constant 0 : i32
    %c0_i32_1 = arith.constant 0 : i32
    return %c0_i32, %c0_i32_0 : i32, i32
  }
  func.func @transform_4(%arg0: i32) -> (i32, i32) {
    %c0_i32 = arith.constant 0 : i32
    %c0_i32_0 = arith.constant 0 : i32
    %c0_i32_1 = arith.constant 0 : i32
    return %c0_i32, %c0_i32_0 : i32, i32
  }
  func.func @transform_5(%arg0: i32) -> (i32, i32) {
    %c0_i32 = arith.constant 0 : i32
    %c0_i32_0 = arith.constant 0 : i32
    %c0_i32_1 = arith.constant 0 : i32
    return %c0_i32, %c0_i32_0 : i32, i32
  }
  func.func @transform_6(%arg0: i32) -> (i32, i32) {
    %c0_i32 = arith.constant 0 : i32
    %c0_i32_0 = arith.constant 0 : i32
    %c0_i32_1 = arith.constant 0 : i32
    return %c0_i32, %c0_i32_0 : i32, i32
  }
  func.func @transform_7(%arg0: i32) -> (i32, i32) {
    %c0_i32 = arith.constant 0 : i32
    %c0_i32_0 = arith.constant 0 : i32
    return %arg0, %c0_i32 : i32, i32
  }
}

module attributes {stable_mosaic.version = 11 : i64} {
  func.func @_fused_mlp_kernel(%arg0: i32, %arg1: memref<16x32xf32, #tpu.memory_space<vmem>>, %arg2: memref<32x64xbf16, #tpu.memory_space<vmem>>, %arg3: memref<1x64xf32, #tpu.memory_space<vmem>>, %arg4: memref<64x64xbf16, #tpu.memory_space<vmem>>, %arg5: memref<1x64xf32, #tpu.memory_space<vmem>>, %arg6: memref<64x16xbf16, #tpu.memory_space<vmem>>, %arg7: memref<1x16xf32, #tpu.memory_space<vmem>>, %arg8: memref<16x16xf32, #tpu.memory_space<vmem>>) attributes {dimension_semantics = [#tpu.dimension_semantics<parallel>], iteration_bounds = array<i64: 1>, scalar_prefetch = 0 : i64, scratch_operands = 0 : i64, tpu.core_type = #tpu.core_type<tc>, window_params = [{transform_indices = @transform_0, window_bounds = array<i64: 16, 32>}, {pipeline_mode = #tpu.pipeline_mode<synchronous>, transform_indices = @transform_1, window_bounds = array<i64: 32, 64>}, {pipeline_mode = #tpu.pipeline_mode<synchronous>, transform_indices = @transform_2, window_bounds = array<i64: 1, 64>}, {pipeline_mode = #tpu.pipeline_mode<synchronous>, transform_indices = @transform_3, window_bounds = array<i64: 64, 64>}, {pipeline_mode = #tpu.pipeline_mode<synchronous>, transform_indices = @transform_4, window_bounds = array<i64: 1, 64>}, {pipeline_mode = #tpu.pipeline_mode<synchronous>, transform_indices = @transform_5, window_bounds = array<i64: 64, 16>}, {pipeline_mode = #tpu.pipeline_mode<synchronous>, transform_indices = @transform_6, window_bounds = array<i64: 1, 16>}, {transform_indices = @transform_7, window_bounds = array<i64: 16, 16>}]} {
    %c0 = arith.constant 0 : index
    %c0_0 = arith.constant 0 : index
    %0 = vector.load %arg1[%c0, %c0_0] : memref<16x32xf32, #tpu.memory_space<vmem>>, vector<16x32xf32>
    %1 = arith.truncf %0 : vector<16x32xf32> to vector<16x32xbf16>
    %c0_1 = arith.constant 0 : index
    %c0_2 = arith.constant 0 : index
    %2 = vector.load %arg2[%c0_1, %c0_2] : memref<32x64xbf16, #tpu.memory_space<vmem>>, vector<32x64xbf16>
    %cst = arith.constant dense<0.000000e+00> : vector<16x64xf32>
    %3 = tpu.matmul %1, %2, %cst {dimension_numbers = #tpu.dot_dimension_numbers<[1], [0], [0], [1], [0, 0, 1, 1], [], []>} : vector<16x32xbf16>, vector<32x64xbf16>, vector<16x64xf32> -> vector<16x64xf32>
    %c0_3 = arith.constant 0 : index
    %c0_4 = arith.constant 0 : index
    %4 = vector.load %arg3[%c0_3, %c0_4] : memref<1x64xf32, #tpu.memory_space<vmem>>, vector<1x64xf32>
    %5 = vector.broadcast %4 : vector<1x64xf32> to vector<16x64xf32>
    %6 = arith.addf %3, %5 : vector<16x64xf32>
    %cst_5 = arith.constant 0.000000e+00 : f32
    %7 = vector.broadcast %cst_5 : f32 to vector<16x64xf32>
    %8 = arith.maximumf %6, %7 : vector<16x64xf32>
    %9 = arith.truncf %8 : vector<16x64xf32> to vector<16x64xbf16>
    %c0_6 = arith.constant 0 : index
    %c0_7 = arith.constant 0 : index
    %10 = vector.load %arg4[%c0_6, %c0_7] : memref<64x64xbf16, #tpu.memory_space<vmem>>, vector<64x64xbf16>
    %cst_8 = arith.constant dense<0.000000e+00> : vector<16x64xf32>
    %11 = tpu.matmul %9, %10, %cst_8 {dimension_numbers = #tpu.dot_dimension_numbers<[1], [0], [0], [1], [0, 0, 1, 1], [], []>} : vector<16x64xbf16>, vector<64x64xbf16>, vector<16x64xf32> -> vector<16x64xf32>
    %c0_9 = arith.constant 0 : index
    %c0_10 = arith.constant 0 : index
    %12 = vector.load %arg5[%c0_9, %c0_10] : memref<1x64xf32, #tpu.memory_space<vmem>>, vector<1x64xf32>
    %13 = vector.broadcast %12 : vector<1x64xf32> to vector<16x64xf32>
    %14 = arith.addf %11, %13 : vector<16x64xf32>
    %cst_11 = arith.constant 0.000000e+00 : f32
    %15 = vector.broadcast %cst_11 : f32 to vector<16x64xf32>
    %16 = arith.maximumf %14, %15 : vector<16x64xf32>
    %17 = arith.truncf %16 : vector<16x64xf32> to vector<16x64xbf16>
    %c0_12 = arith.constant 0 : index
    %c0_13 = arith.constant 0 : index
    %18 = vector.load %arg6[%c0_12, %c0_13] : memref<64x16xbf16, #tpu.memory_space<vmem>>, vector<64x16xbf16>
    %cst_14 = arith.constant dense<0.000000e+00> : vector<16x16xf32>
    %19 = tpu.matmul %17, %18, %cst_14 {dimension_numbers = #tpu.dot_dimension_numbers<[1], [0], [0], [1], [0, 0, 1, 1], [], []>} : vector<16x64xbf16>, vector<64x16xbf16>, vector<16x16xf32> -> vector<16x16xf32>
    %c0_15 = arith.constant 0 : index
    %c0_16 = arith.constant 0 : index
    %20 = vector.load %arg7[%c0_15, %c0_16] : memref<1x16xf32, #tpu.memory_space<vmem>>, vector<1x16xf32>
    %21 = vector.broadcast %20 : vector<1x16xf32> to vector<16x16xf32>
    %22 = arith.addf %19, %21 : vector<16x16xf32>
    %c0_17 = arith.constant 0 : index
    %c0_18 = arith.constant 0 : index
    %23 = vector.load %arg8[%c0_17, %c0_18] : memref<16x16xf32, #tpu.memory_space<vmem>>, vector<16x16xf32>
    tpu.vector_store %arg8[%c0_17, %c0_18], %22 {strides = array<i32>} : memref<16x16xf32, #tpu.memory_space<vmem>>, vector<16x16xf32>,
    return
  }
  func.func @transform_0(%arg0: i32) -> (i32, i32) {
    %c0_i32 = arith.constant 0 : i32
    %c0_i32_0 = arith.constant 0 : i32
    return %arg0, %c0_i32 : i32, i32
  }
  func.func @transform_1(%arg0: i32) -> (i32, i32) {
    %c0_i32 = arith.constant 0 : i32
    %c0_i32_0 = arith.constant 0 : i32
    %c0_i32_1 = arith.constant 0 : i32
    return %c0_i32, %c0_i32_0 : i32, i32
  }
  func.func @transform_2(%arg0: i32) -> (i32, i32) {
    %c0_i32 = arith.constant 0 : i32
    %c0_i32_0 = arith.constant 0 : i32
    %c0_i32_1 = arith.constant 0 : i32
    return %c0_i32, %c0_i32_0 : i32, i32
  }
  func.func @transform_3(%arg0: i32) -> (i32, i32) {
    %c0_i32 = arith.constant 0 : i32
    %c0_i32_0 = arith.constant 0 : i32
    %c0_i32_1 = arith.constant 0 : i32
    return %c0_i32, %c0_i32_0 : i32, i32
  }
  func.func @transform_4(%arg0: i32) -> (i32, i32) {
    %c0_i32 = arith.constant 0 : i32
    %c0_i32_0 = arith.constant 0 : i32
    %c0_i32_1 = arith.constant 0 : i32
    return %c0_i32, %c0_i32_0 : i32, i32
  }
  func.func @transform_5(%arg0: i32) -> (i32, i32) {
    %c0_i32 = arith.constant 0 : i32
    %c0_i32_0 = arith.constant 0 : i32
    %c0_i32_1 = arith.constant 0 : i32
    return %c0_i32, %c0_i32_0 : i32, i32
  }
  func.func @transform_6(%arg0: i32) -> (i32, i32) {
    %c0_i32 = arith.constant 0 : i32
    %c0_i32_0 = arith.constant 0 : i32
    %c0_i32_1 = arith.constant 0 : i32
    return %c0_i32, %c0_i32_0 : i32, i32
  }
  func.func @transform_7(%arg0: i32) -> (i32, i32) {
    %c0_i32 = arith.constant 0 : i32
    %c0_i32_0 = arith.constant 0 : i32
    return %arg0, %c0_i32 : i32, i32
  }
}

</mosaic_0001>

<bundles_post_ra>
// kernel: tpu_custom_call.1
= control target key start
LH: loop header
LB: loop body
LE: loop exit
PB: predicated region body
PF: predicated region fallthrough
CT: control target
= control target key end

     0   :  { %12 = vsyncpa [#allocation3], 0  ;;  %s549_s0 = inlined_call_operand.vmem [shape: f32[16,32], index: 0, kind: input, shape index: {}]   ;;  %s550_s1 = inlined_call_operand.hbm [shape: bf16[32,64], index: 1, kind: input, shape index: {}]   ;;  %s551_s2 = inlined_call_operand.vmem [shape: f32[1,64], index: 2, kind: input, shape index: {}]   ;;  %s552_s3 = inlined_call_operand.vmem [shape: bf16[64,64], index: 3, kind: input, shape index: {}]   ;;  %s553_s4 = inlined_call_operand.vmem [shape: f32[1,64], index: 4, kind: input, shape index: {}]   ;;  %s554_s5 = inlined_call_operand.vmem [shape: bf16[64,16], index: 5, kind: input, shape index: {}]   ;;  %s555_s6 = inlined_call_operand.vmem [shape: f32[1,16], index: 6, kind: input, shape index: {}]   ;;  %s556_s7 = inlined_call_operand.hbm [shape: f32[16,16], index: 7, kind: output, shape index: {}]  }
   0x1   :  { %13 = vsyncpa [#allocation4], 0  ;;  %s433_s24 = smov [#allocation2]   ;;  %s385_s28 = scalar_lea.hbm %s550_s1, 256 }
   0x2   :  { %s21_s25 = sshll.u32 %s433_s24, 4  ;;  %p386_p0 = scmp.ne.s32.totalorder %s550_s1, %s385_s28  ;;  %s22_s25 = int_to_ptr.vmem [resolvable:$true] %s21_s25 }
   0x3   :  { %p389_p1 = scmp.lt.u32.totalorder %s385_s28, %s550_s1 }
   0x5   :  { %p391_p2 = pnand %p389_p1, %p386_p0 }
   0x7   :  { %394 = shalt.err (!%p391_p2)
}
   0x8   :  { %s395_s10 = scalar_lea.vmem %s22_s25, 256  ;;  %p400_p4 = scmp.lt.s32.totalorder %s22_s25, %s22_s25 }
   0x9   :  { %p396_p3 = scmp.ne.s32.totalorder %s22_s25, %s395_s10  ;;  %p401_p5 = scmp.lt.s32.totalorder %s395_s10, %s395_s10 }
   0xb   :  { %p402_p6 = por %p401_p5, %p400_p4 }
   0xd   :  { %p403_p7 = pnand %p402_p6, %p396_p3 }
   0xf   :  { %406 = shalt.err (!%p403_p7)
}
  0x10   :  { %s434_s11 = smov 64   ;;  %s435_s12 = smov 4  }
  0x11   :  { %27 = dma.hbm_to_vmem [thread:$0]  %s550_s1, 256, %s22_s25, [#allocation3], %s434_s11, %s434_s11, %s435_s12  }
  0x12   :  { %429 = dma.done.wait [#allocation3], 256  }
  0x13   :  { %430 = vsyncadd [#allocation3], 4294967040  ;;  %v436_v0 = vmov 0.0   ;;  %vm437_vm0 = vmmov 0   ;;  %v375_v1 = vld [vmem:[#allocation2] sm:$0xff]   ;;  %v376_v2 = vld [vmem:[#allocation2 + $0x8] sm:$0xff]  }
  0x14   :  { %335 = vmatprep.subr.bf16.mxu0 %v436_v0  ;;  %339 = vmatprep.mubr.msk.bf16.mxu0 %vm437_vm0, %v436_v0  ;;  %v42_v3 = vld [vmem:[%s549_s0] sm:$0xff]  ;;  %v43_v4 = vld [vmem:[%s549_s0 + $0x8] sm:$0xff]  ;;  %vm68_vm1 = vcmask 261120   ;;  %v379_v8 = vld [vmem:[%s552_s3 + $0x10] sm:$0xff]   ;;  %vm155_vm2 = vcmask 523264   ;;  %vm286_vm3 = vcmask 130048  }
  0x15   :  { %343 = vmatprep.subr.bf16.mxu1 %v436_v0  ;;  %351 = vmatprep.mubr.msk.bf16.mxu1 %vm437_vm0, %v436_v0  ;;  %v377_v5 = vld [vmem:[%s552_s3] sm:$0xff]   ;;  %v378_v6 = vld [vmem:[%s552_s3 + $0x8] sm:$0xff]   ;;  %v44_v7 = vpack.c.bf16 %v43_v4, %v42_v3  ;;  %v380_v9 = vld [vmem:[%s552_s3 + $0x18] sm:$0xff]  }
  0x16   :  { %336 = vmatpush3.bf16.msra.mxu0 %v375_v1  ;;  %344 = vmatpush3.bf16.msra.mxu1 %v377_v5  ;;  %v381_v10 = vld [vmem:[%s554_s5] sm:$0xff]   ;;  %v382_v11 = vld [vmem:[%s554_s5 + $0x8] sm:$0xff]   ;;  %v383_v22 = vld [vmem:[%s554_s5 + $0x10] sm:$0xff]  }
  0x17   :  { %337 = vmatprep.subr.bf16.mxu0 %v436_v0  ;;  %345 = vmatprep.subr.bf16.mxu1 %v436_v0  ;;  %v306_v12 = vld [vmem:[%s551_s2] ss:$0 sm:$0xff]  ;;  %v384_v23 = vld [vmem:[%s554_s5 + $0x18] sm:$0xff]   ;;  %s438_s5 = smov [#allocation5]  }
  0x18   :  { %v310_v24 = vld [vmem:[%s553_s4] ss:$0 sm:$0xff]  ;;  %s294_s14 = sshll.u32 %s438_s5, 4  ;;  %s295_s14 = int_to_ptr.vmem [resolvable:$true] %s294_s14 }
  0x19   :  { %v316_v34 = vld [vmem:[%s555_s6] ss:$0 sm:$0xff]  ;;  %s407_s4 = scalar_lea.vmem %s295_s14, 256  ;;  %p412_p9 = scmp.lt.s32.totalorder %s295_s14, %s295_s14 }
  0x1a   :  { %338 = vmatpush3.bf16.msra.mxu0 %v376_v2  ;;  %346 = vmatpush3.bf16.msra.mxu1 %v378_v6  ;;  %p408_p8 = scmp.ne.s32.totalorder %s295_s14, %s407_s4  ;;  %p413_p10 = scmp.lt.s32.totalorder %s407_s4, %s407_s4 }
  0x1b   :  { %355 = vmatprep.subr.bf16.mxu0 %v436_v0  ;;  %347 = vmatprep.subr.bf16.mxu1 %v436_v0 }
  0x1c   :  { %p414_p11 = por %p413_p10, %p412_p9 }
  0x1d   :  { %340 = vmatmul.mubr.msk.bf16.vlgmr.msra.gmra.mrb[0].mxu0 %vm68_vm1, %v44_v7 }
  0x1e   :  { %363 = vmatprep.mubr.msk.bf16.mxu0 %vm437_vm0, %v436_v0  ;;  %348 = vmatpush3.bf16.msra.mxu1 %v379_v8  ;;  %p415_p12 = pnand %p414_p11, %p408_p8 }
  0x1f   :  { %349 = vmatprep.subr.bf16.mxu1 %v436_v0  ;;  %356 = vmatpush3.bf16.msra.mxu0 %v381_v10 }
  0x20   :  { %357 = vmatprep.subr.bf16.mxu0 %v436_v0 }
  0x22   :  { %350 = vmatpush3.bf16.msra.mxu1 %v380_v9 }
  0x23   :  { %358 = vmatpush3.bf16.msra.mxu0 %v382_v11 }
  0x24   :  { %359 = vmatprep.subr.bf16.mxu0 %v436_v0 }
  0x27   :  { %360 = vmatpush3.bf16.msra.mxu0 %v383_v22 }
  0x28   :  { %361 = vmatprep.subr.bf16.mxu0 %v436_v0 }
  0x2b   :  { %362 = vmatpush3.bf16.msra.mxu0 %v384_v23 }
  0xf0   :  { %v106_v13 = vpop.f32.mrb[0].mxu0 }
  0xf1   :  { %v107_v14 = vadd.f32 %v306_v12, %v106_v13  ;;  %v341_v15 = vpop.f32.mrb[1].mxu0 }
  0xf2   :  { %v109_v16 = vpop.f32.mrb[2].mxu0 }
  0xf3   :  { %v110_v17 = vadd.f32 %v306_v12, %v109_v16  ;;  %v342_v18 = vpop.f32.mrb[3].mxu0  ;;  %v113_v19 = vmax.f32 %v107_v14, 0.0 }
  0xf5   :  { %v114_v20 = vmax.f32 %v110_v17, 0.0 }
  0xf7   :  { %v115_v21 = vpack.c.bf16 %v114_v20, %v113_v19 }
  0xf9   :  { %352 = vmatmul.mubr.msk.bf16.vlgmr.msra.gmra.mrb[0].mxu1 %vm155_vm2, %v115_v21 }
 0x1cc   :  { %v193_v25 = vpop.f32.mrb[0].mxu1 }
 0x1cd   :  { %v194_v26 = vadd.f32 %v310_v24, %v193_v25  ;;  %v353_v27 = vpop.f32.mrb[1].mxu1 }
 0x1ce   :  { %v196_v28 = vpop.f32.mrb[2].mxu1 }
 0x1cf   :  { %v197_v29 = vadd.f32 %v310_v24, %v196_v28  ;;  %v354_v30 = vpop.f32.mrb[3].mxu1  ;;  %v200_v31 = vmax.f32 %v194_v26, 0.0 }
 0x1d1   :  { %v201_v32 = vmax.f32 %v197_v29, 0.0 }
 0x1d3   :  { %v202_v33 = vpack.c.bf16 %v201_v32, %v200_v31 }
 0x1d5   :  { %364 = vmatmul.mubr.msk.bf16.vlgmr.msra.gmra.mrb[4].mxu0 %vm155_vm2, %v202_v33 }
 0x2a8   :  { %v279_v35 = vpop.f32.mrb[4].mxu0 }
 0x2a9   :  { %v280_v36 = vadd.f32 %v316_v34, %v279_v35  ;;  %v365_v37 = vpop.f32.mrb[5].mxu0 }
 0x2aa   :  { %v282_v38 = vpop.f32.mrb[6].mxu0 }
 0x2ab   :  { %287 = vst.msk [vmem:[#allocation5] sm:$0xff] %vm286_vm3, %v280_v36  ;;  %v283_v39 = vadd.f32 %v316_v34, %v282_v38  ;;  %v366_v40 = vpop.f32.mrb[7].mxu0 }
 0x2ad   :  { %288 = vst.msk [vmem:[#allocation5 + $0x8] sm:$0xff] %vm286_vm3, %v283_v39 }
 0x2ae   :  { %418 = shalt.err (!%p415_p12)
}
 0x2af   :  { %s419_s16 = scalar_lea.hbm %s556_s7, 256 }
 0x2b0   :  { %p420_p13 = scmp.ne.s32.totalorder %s556_s7, %s419_s16  ;;  %p423_p0 = scmp.lt.u32.totalorder %s419_s16, %s556_s7 }
 0x2b2   :  { %p425_p1 = pnand %p423_p0, %p420_p13 }
 0x2b4   :  { %428 = shalt.err (!%p425_p1)
}
 0x2b5   :  { %s439_s20 = smov 128   ;;  %s440_s21 = smov 8  }
 0x2b6   :  { %300 = dma.vmem_to_hbm [thread:$0]  %s295_s14, 256, %s556_s7, [#allocation4], %s439_s20, %s439_s20, %s440_s21  }
 0x2b7   :  { %431 = dma.done.wait [#allocation4], 256  }
 0x2b8   :  { %432 = vsyncadd [#allocation4], 4294967040 }
 0x2b9   :  { %304 = vsyncpa [#allocation3], 1 }
 0x2ba   :  { %305 = vsyncpa [#allocation4], 1 }

// kernel: tpu_custom_call.1
= control target key start
LH: loop header
LB: loop body
LE: loop exit
PB: predicated region body
PF: predicated region fallthrough
CT: control target
= control target key end

     0   :  { %12 = vsyncpa [#allocation3], 0  ;;  %s549_s0 = inlined_call_operand.vmem [shape: f32[16,32], index: 0, kind: input, shape index: {}]   ;;  %s550_s1 = inlined_call_operand.hbm [shape: bf16[32,64], index: 1, kind: input, shape index: {}]   ;;  %s551_s2 = inlined_call_operand.vmem [shape: f32[1,64], index: 2, kind: input, shape index: {}]   ;;  %s552_s3 = inlined_call_operand.vmem [shape: bf16[64,64], index: 3, kind: input, shape index: {}]   ;;  %s553_s4 = inlined_call_operand.vmem [shape: f32[1,64], index: 4, kind: input, shape index: {}]   ;;  %s554_s5 = inlined_call_operand.vmem [shape: bf16[64,16], index: 5, kind: input, shape index: {}]   ;;  %s555_s6 = inlined_call_operand.vmem [shape: f32[1,16], index: 6, kind: input, shape index: {}]   ;;  %s556_s7 = inlined_call_operand.hbm [shape: f32[16,16], index: 7, kind: output, shape index: {}]  }
   0x1   :  { %13 = vsyncpa [#allocation4], 0  ;;  %s433_s24 = smov [#allocation2]   ;;  %s385_s28 = scalar_lea.hbm %s550_s1, 256 }
   0x2   :  { %s21_s25 = sshll.u32 %s433_s24, 4  ;;  %p386_p0 = scmp.ne.s32.totalorder %s550_s1, %s385_s28  ;;  %s22_s25 = int_to_ptr.vmem [resolvable:$true] %s21_s25 }
   0x3   :  { %p389_p1 = scmp.lt.u32.totalorder %s385_s28, %s550_s1 }
   0x5   :  { %p391_p2 = pnand %p389_p1, %p386_p0 }
   0x7   :  { %394 = shalt.err (!%p391_p2)
}
   0x8   :  { %s395_s10 = scalar_lea.vmem %s22_s25, 256  ;;  %p400_p4 = scmp.lt.s32.totalorder %s22_s25, %s22_s25 }
   0x9   :  { %p396_p3 = scmp.ne.s32.totalorder %s22_s25, %s395_s10  ;;  %p401_p5 = scmp.lt.s32.totalorder %s395_s10, %s395_s10 }
   0xb   :  { %p402_p6 = por %p401_p5, %p400_p4 }
   0xd   :  { %p403_p7 = pnand %p402_p6, %p396_p3 }
   0xf   :  { %406 = shalt.err (!%p403_p7)
}
  0x10   :  { %s434_s11 = smov 64   ;;  %s435_s12 = smov 4  }
  0x11   :  { %27 = dma.hbm_to_vmem [thread:$0]  %s550_s1, 256, %s22_s25, [#allocation3], %s434_s11, %s434_s11, %s435_s12  }
  0x12   :  { %429 = dma.done.wait [#allocation3], 256  }
  0x13   :  { %430 = vsyncadd [#allocation3], 4294967040  ;;  %v436_v0 = vmov 0.0   ;;  %vm437_vm0 = vmmov 0   ;;  %v375_v1 = vld [vmem:[#allocation2] sm:$0xff]   ;;  %v376_v2 = vld [vmem:[#allocation2 + $0x8] sm:$0xff]  }
  0x14   :  { %335 = vmatprep.subr.bf16.mxu0 %v436_v0  ;;  %339 = vmatprep.mubr.msk.bf16.mxu0 %vm437_vm0, %v436_v0  ;;  %v42_v3 = vld [vmem:[%s549_s0] sm:$0xff]  ;;  %v43_v4 = vld [vmem:[%s549_s0 + $0x8] sm:$0xff]  ;;  %vm68_vm1 = vcmask 261120   ;;  %v379_v8 = vld [vmem:[%s552_s3 + $0x10] sm:$0xff]   ;;  %vm155_vm2 = vcmask 523264   ;;  %vm286_vm3 = vcmask 130048  }
  0x15   :  { %343 = vmatprep.subr.bf16.mxu1 %v436_v0  ;;  %351 = vmatprep.mubr.msk.bf16.mxu1 %vm437_vm0, %v436_v0  ;;  %v377_v5 = vld [vmem:[%s552_s3] sm:$0xff]   ;;  %v378_v6 = vld [vmem:[%s552_s3 + $0x8] sm:$0xff]   ;;  %v44_v7 = vpack.c.bf16 %v43_v4, %v42_v3  ;;  %v380_v9 = vld [vmem:[%s552_s3 + $0x18] sm:$0xff]  }
  0x16   :  { %336 = vmatpush3.bf16.msra.mxu0 %v375_v1  ;;  %344 = vmatpush3.bf16.msra.mxu1 %v377_v5  ;;  %v381_v10 = vld [vmem:[%s554_s5] sm:$0xff]   ;;  %v382_v11 = vld [vmem:[%s554_s5 + $0x8] sm:$0xff]   ;;  %v383_v22 = vld [vmem:[%s554_s5 + $0x10] sm:$0xff]  }
  0x17   :  { %337 = vmatprep.subr.bf16.mxu0 %v436_v0  ;;  %345 = vmatprep.subr.bf16.mxu1 %v436_v0  ;;  %v306_v12 = vld [vmem:[%s551_s2] ss:$0 sm:$0xff]  ;;  %v384_v23 = vld [vmem:[%s554_s5 + $0x18] sm:$0xff]   ;;  %s438_s5 = smov [#allocation5]  }
  0x18   :  { %v310_v24 = vld [vmem:[%s553_s4] ss:$0 sm:$0xff]  ;;  %s294_s14 = sshll.u32 %s438_s5, 4  ;;  %s295_s14 = int_to_ptr.vmem [resolvable:$true] %s294_s14 }
  0x19   :  { %v316_v34 = vld [vmem:[%s555_s6] ss:$0 sm:$0xff]  ;;  %s407_s4 = scalar_lea.vmem %s295_s14, 256  ;;  %p412_p9 = scmp.lt.s32.totalorder %s295_s14, %s295_s14 }
  0x1a   :  { %338 = vmatpush3.bf16.msra.mxu0 %v376_v2  ;;  %346 = vmatpush3.bf16.msra.mxu1 %v378_v6  ;;  %p408_p8 = scmp.ne.s32.totalorder %s295_s14, %s407_s4  ;;  %p413_p10 = scmp.lt.s32.totalorder %s407_s4, %s407_s4 }
  0x1b   :  { %355 = vmatprep.subr.bf16.mxu0 %v436_v0  ;;  %347 = vmatprep.subr.bf16.mxu1 %v436_v0 }
  0x1c   :  { %p414_p11 = por %p413_p10, %p412_p9 }
  0x1d   :  { %340 = vmatmul.mubr.msk.bf16.vlgmr.msra.gmra.mrb[0].mxu0 %vm68_vm1, %v44_v7 }
  0x1e   :  { %363 = vmatprep.mubr.msk.bf16.mxu0 %vm437_vm0, %v436_v0  ;;  %348 = vmatpush3.bf16.msra.mxu1 %v379_v8  ;;  %p415_p12 = pnand %p414_p11, %p408_p8 }
  0x1f   :  { %349 = vmatprep.subr.bf16.mxu1 %v436_v0  ;;  %356 = vmatpush3.bf16.msra.mxu0 %v381_v10 }
  0x20   :  { %357 = vmatprep.subr.bf16.mxu0 %v436_v0 }
  0x22   :  { %350 = vmatpush3.bf16.msra.mxu1 %v380_v9 }
  0x23   :  { %358 = vmatpush3.bf16.msra.mxu0 %v382_v11 }
  0x24   :  { %359 = vmatprep.subr.bf16.mxu0 %v436_v0 }
  0x27   :  { %360 = vmatpush3.bf16.msra.mxu0 %v383_v22 }
  0x28   :  { %361 = vmatprep.subr.bf16.mxu0 %v436_v0 }
  0x2b   :  { %362 = vmatpush3.bf16.msra.mxu0 %v384_v23 }
  0xf0   :  { %v106_v13 = vpop.f32.mrb[0].mxu0 }
  0xf1   :  { %v107_v14 = vadd.f32 %v306_v12, %v106_v13  ;;  %v341_v15 = vpop.f32.mrb[1].mxu0 }
  0xf2   :  { %v109_v16 = vpop.f32.mrb[2].mxu0 }
  0xf3   :  { %v110_v17 = vadd.f32 %v306_v12, %v109_v16  ;;  %v342_v18 = vpop.f32.mrb[3].mxu0  ;;  %v113_v19 = vmax.f32 %v107_v14, 0.0 }
  0xf5   :  { %v114_v20 = vmax.f32 %v110_v17, 0.0 }
  0xf7   :  { %v115_v21 = vpack.c.bf16 %v114_v20, %v113_v19 }
  0xf9   :  { %352 = vmatmul.mubr.msk.bf16.vlgmr.msra.gmra.mrb[0].mxu1 %vm155_vm2, %v115_v21 }
 0x1cc   :  { %v193_v25 = vpop.f32.mrb[0].mxu1 }
 0x1cd   :  { %v194_v26 = vadd.f32 %v310_v24, %v193_v25  ;;  %v353_v27 = vpop.f32.mrb[1].mxu1 }
 0x1ce   :  { %v196_v28 = vpop.f32.mrb[2].mxu1 }
 0x1cf   :  { %v197_v29 = vadd.f32 %v310_v24, %v196_v28  ;;  %v354_v30 = vpop.f32.mrb[3].mxu1  ;;  %v200_v31 = vmax.f32 %v194_v26, 0.0 }
 0x1d1   :  { %v201_v32 = vmax.f32 %v197_v29, 0.0 }
 0x1d3   :  { %v202_v33 = vpack.c.bf16 %v201_v32, %v200_v31 }
 0x1d5   :  { %364 = vmatmul.mubr.msk.bf16.vlgmr.msra.gmra.mrb[4].mxu0 %vm155_vm2, %v202_v33 }
 0x2a8   :  { %v279_v35 = vpop.f32.mrb[4].mxu0 }
 0x2a9   :  { %v280_v36 = vadd.f32 %v316_v34, %v279_v35  ;;  %v365_v37 = vpop.f32.mrb[5].mxu0 }
 0x2aa   :  { %v282_v38 = vpop.f32.mrb[6].mxu0 }
 0x2ab   :  { %287 = vst.msk [vmem:[#allocation5] sm:$0xff] %vm286_vm3, %v280_v36  ;;  %v283_v39 = vadd.f32 %v316_v34, %v282_v38  ;;  %v366_v40 = vpop.f32.mrb[7].mxu0 }
 0x2ad   :  { %288 = vst.msk [vmem:[#allocation5 + $0x8] sm:$0xff] %vm286_vm3, %v283_v39 }
 0x2ae   :  { %418 = shalt.err (!%p415_p12)
}
 0x2af   :  { %s419_s16 = scalar_lea.hbm %s556_s7, 256 }
 0x2b0   :  { %p420_p13 = scmp.ne.s32.totalorder %s556_s7, %s419_s16  ;;  %p423_p0 = scmp.lt.u32.totalorder %s419_s16, %s556_s7 }
 0x2b2   :  { %p425_p1 = pnand %p423_p0, %p420_p13 }
 0x2b4   :  { %428 = shalt.err (!%p425_p1)
}
 0x2b5   :  { %s439_s20 = smov 128   ;;  %s440_s21 = smov 8  }
 0x2b6   :  { %300 = dma.vmem_to_hbm [thread:$0]  %s295_s14, 256, %s556_s7, [#allocation4], %s439_s20, %s439_s20, %s440_s21  }
 0x2b7   :  { %431 = dma.done.wait [#allocation4], 256  }
 0x2b8   :  { %432 = vsyncadd [#allocation4], 4294967040 }
 0x2b9   :  { %304 = vsyncpa [#allocation3], 1 }
 0x2ba   :  { %305 = vsyncpa [#allocation4], 1 }

</bundles_post_ra>
